<compile_context>
chip_gen: v5e
topology: v5e:2x2
jax: 0.10.0
libtpu: 0.0.40
codegen_flags: <defaults>
</compile_context>

<pallas_src>
import math

import jax
import jax.numpy as jnp
from jax import lax
from jax.experimental import pallas as pl
from jax.experimental.pallas import tpu as pltpu


# ---- tile geometry -----------------------------------------------------------
_LANES = 1024          # output tile lane width (multiple of 128 -> dense vst)
_HALF = _LANES // 2    # lanes per Box-Muller stream (still a multiple of 128)
_MAX_TILE_ROWS = 512   # 512 x 1024 x 4 B = 2 MiB / tile (x2 double-buffered)


def _mix32(x):
    """32-bit avalanche hash (lowbias32).  uint32 -> uint32, cheap VPU ops."""
    x = x ^ (x >> jnp.uint32(16))
    x = x * jnp.uint32(0x7FEB352D)
    x = x ^ (x >> jnp.uint32(15))
    x = x * jnp.uint32(0x846CA68B)
    x = x ^ (x >> jnp.uint32(16))
    return x


def _u01_from_bits(bits):
    """Uniform [0, 1) from uint32 via the mantissa trick (no int->f32 convert)."""
    f = lax.bitcast_convert_type(
        (bits >> jnp.uint32(9)) | jnp.uint32(0x3F800000), jnp.float32)  # [1, 2)
    return f - jnp.float32(1.0)


def _randn_kernel(seed_ref, o_ref):
    tile_r, lanes = o_ref.shape
    half = lanes // 2

    # Unique global counter for every generated pair (row-major over the padded
    # (rows, half) layout) -> different tiles never emit identical blocks.
    i = pl.program_id(0)
    row = lax.broadcasted_iota(jnp.int32, (tile_r, half), 0)
    col = lax.broadcasted_iota(jnp.int32, (tile_r, half), 1)
    flat = (i * tile_r + row) * half + col
    ctr = flat.astype(jnp.uint32) * jnp.uint32(2)

    key = seed_ref[0] * jnp.uint32(0x9E3779B9) + jnp.uint32(0x85EBCA6B)

    bits1 = _mix32(ctr + key)
    bits2 = _mix32(ctr + jnp.uint32(1) + key)

    # u1 in (0, 1] so log() is safe; u2 in [0, 1).
    u1 = jnp.float32(1.0) - _u01_from_bits(bits1)
    u2 = _u01_from_bits(bits2)

    # Box-Muller: use BOTH branches -> half the PRNG / log / sqrt work.
    r = jnp.sqrt(jnp.float32(-2.0) * jnp.log(u1))
    theta = jnp.float32(2.0 * math.pi) * u2
    o_ref[:, :half] = r * jnp.cos(theta)
    o_ref[:, half:] = r * jnp.sin(theta)


def my_module_forward(x, seed: int = 0):
    """Pallas equivalent of MyModule.forward: returns randn(x.shape), float32."""
    shape = tuple(x.shape)
    total = int(math.prod(shape)) if shape else 1

    # Lane-dense padded layout: (rows, _LANES), rows a multiple of the tile
    # height (tile height itself a multiple of 8 for sublane alignment).
    rows_needed = max(1, -(-total // _LANES))
    tile_r = min(_MAX_TILE_ROWS, ((rows_needed + 7) // 8) * 8)
    n_tiles = -(-rows_needed // tile_r)
    rows = n_tiles * tile_r

    seed_arr = jnp.array([seed], dtype=jnp.uint32)

    flat = pl.pallas_call(
        _randn_kernel,
        out_shape=jax.ShapeDtypeStruct((rows, _LANES), jnp.float32),
        grid=(n_tiles,),
        in_specs=[pl.BlockSpec(memory_space=pltpu.MemorySpace.SMEM)],
        out_specs=pl.BlockSpec((tile_r, _LANES), lambda i: (i, 0)),
        compiler_params=pltpu.CompilerParams(
            dimension_semantics=("parallel",)),
    )(seed_arr)

    return flat.reshape(-1)[:total].reshape(shape)


if __name__ == "__main__":
    key = jax.random.PRNGKey(0)
    # Example input consistent with an NCHW conv-style tensor.
    x = jax.random.normal(key, (2, 4, 16, 16), dtype=jnp.float32)

    out = my_module_forward(x, seed=0)
    out = jax.block_until_ready(out)

    assert out.shape == x.shape, (out.shape, x.shape)
    assert out.dtype == jnp.float32
    # Light sanity check that it looks like a standard normal sample.
    assert bool(jnp.isfinite(out).all())
    assert abs(float(out.mean())) < 0.5
    assert 0.5 < float(out.std()) < 1.5

    print("KERNEL_OK")
</pallas_src>

<mosaic_0001>
module attributes {stable_mosaic.version = 11 : i64} {
  func.func @_randn_kernel(%arg0: i32, %arg1: memref<1xi32, #tpu.memory_space<smem>>, %arg2: memref<8x1024xf32, #tpu.memory_space<vmem>>) attributes {dimension_semantics = [#tpu.dimension_semantics<parallel>], iteration_bounds = array<i64: 1>, scalar_prefetch = 0 : i64, scratch_operands = 0 : i64, tpu.core_type = #tpu.core_type<tc>, window_params = [{transform_indices = @transform_0, window_bounds = array<i64: 1>}, {transform_indices = @transform_1, window_bounds = array<i64: 8, 1024>}]} {
    %0 = tpu.iota {dimensions = array<i32: 0>} : vector<8x512xi32>
    %1 = tpu.iota {dimensions = array<i32: 1>} : vector<8x512xi32>
    %c8_i32 = arith.constant 8 : i32
    %2 = arith.muli %arg0, %c8_i32 : i32
    %3 = vector.broadcast %2 : i32 to vector<8x512xi32>
    %4 = arith.addi %3, %0 : vector<8x512xi32>
    %c512_i32 = arith.constant 512 : i32
    %5 = vector.broadcast %c512_i32 : i32 to vector<8x512xi32>
    %6 = arith.muli %4, %5 : vector<8x512xi32>
    %7 = arith.addi %6, %1 : vector<8x512xi32>
    %c2_i32 = arith.constant 2 : i32
    %8 = vector.broadcast %c2_i32 : i32 to vector<8x512xi32>
    %9 = arith.muli %7, %8 : vector<8x512xi32>
    %c0 = arith.constant 0 : index
    %10 = memref.load %arg1[%c0] : memref<1xi32, #tpu.memory_space<smem>>
    %c-1640531527_i32 = arith.constant -1640531527 : i32
    %11 = arith.muli %10, %c-1640531527_i32 : i32
    %c-2048144789_i32 = arith.constant -2048144789 : i32
    %12 = arith.addi %11, %c-2048144789_i32 : i32
    %13 = vector.broadcast %12 : i32 to vector<8x512xi32>
    %14 = arith.addi %9, %13 : vector<8x512xi32>
    %c16_i32 = arith.constant 16 : i32
    %15 = vector.broadcast %c16_i32 : i32 to vector<8x512xi32>
    %16 = arith.shrui %14, %15 : vector<8x512xi32>
    %17 = arith.xori %14, %16 : vector<8x512xi32>
    %c2146121005_i32 = arith.constant 2146121005 : i32
    %18 = vector.broadcast %c2146121005_i32 : i32 to vector<8x512xi32>
    %19 = arith.muli %17, %18 : vector<8x512xi32>
    %c15_i32 = arith.constant 15 : i32
    %20 = vector.broadcast %c15_i32 : i32 to vector<8x512xi32>
    %21 = arith.shrui %19, %20 : vector<8x512xi32>
    %22 = arith.xori %19, %21 : vector<8x512xi32>
    %c-2073254261_i32 = arith.constant -2073254261 : i32
    %23 = vector.broadcast %c-2073254261_i32 : i32 to vector<8x512xi32>
    %24 = arith.muli %22, %23 : vector<8x512xi32>
    %c16_i32_0 = arith.constant 16 : i32
    %25 = vector.broadcast %c16_i32_0 : i32 to vector<8x512xi32>
    %26 = arith.shrui %24, %25 : vector<8x512xi32>
    %27 = arith.xori %24, %26 : vector<8x512xi32>
    %c1_i32 = arith.constant 1 : i32
    %28 = vector.broadcast %c1_i32 : i32 to vector<8x512xi32>
    %29 = arith.addi %9, %28 : vector<8x512xi32>
    %30 = vector.broadcast %12 : i32 to vector<8x512xi32>
    %31 = arith.addi %29, %30 : vector<8x512xi32>
    %c16_i32_1 = arith.constant 16 : i32
    %32 = vector.broadcast %c16_i32_1 : i32 to vector<8x512xi32>
    %33 = arith.shrui %31, %32 : vector<8x512xi32>
    %34 = arith.xori %31, %33 : vector<8x512xi32>
    %c2146121005_i32_2 = arith.constant 2146121005 : i32
    %35 = vector.broadcast %c2146121005_i32_2 : i32 to vector<8x512xi32>
    %36 = arith.muli %34, %35 : vector<8x512xi32>
    %c15_i32_3 = arith.constant 15 : i32
    %37 = vector.broadcast %c15_i32_3 : i32 to vector<8x512xi32>
    %38 = arith.shrui %36, %37 : vector<8x512xi32>
    %39 = arith.xori %36, %38 : vector<8x512xi32>
    %c-2073254261_i32_4 = arith.constant -2073254261 : i32
    %40 = vector.broadcast %c-2073254261_i32_4 : i32 to vector<8x512xi32>
    %41 = arith.muli %39, %40 : vector<8x512xi32>
    %c16_i32_5 = arith.constant 16 : i32
    %42 = vector.broadcast %c16_i32_5 : i32 to vector<8x512xi32>
    %43 = arith.shrui %41, %42 : vector<8x512xi32>
    %44 = arith.xori %41, %43 : vector<8x512xi32>
    %c9_i32 = arith.constant 9 : i32
    %45 = vector.broadcast %c9_i32 : i32 to vector<8x512xi32>
    %46 = arith.shrui %27, %45 : vector<8x512xi32>
    %c1065353216_i32 = arith.constant 1065353216 : i32
    %47 = vector.broadcast %c1065353216_i32 : i32 to vector<8x512xi32>
    %48 = arith.ori %46, %47 : vector<8x512xi32>
    %49 = tpu.bitcast %48 : vector<8x512xi32> -> vector<8x512xf32>
    %cst = arith.constant 1.000000e+00 : f32
    %50 = vector.broadcast %cst : f32 to vector<8x512xf32>
    %51 = arith.subf %49, %50 : vector<8x512xf32>
    %cst_6 = arith.constant 1.000000e+00 : f32
    %52 = vector.broadcast %cst_6 : f32 to vector<8x512xf32>
    %53 = arith.subf %52, %51 : vector<8x512xf32>
    %c9_i32_7 = arith.constant 9 : i32
    %54 = vector.broadcast %c9_i32_7 : i32 to vector<8x512xi32>
    %55 = arith.shrui %44, %54 : vector<8x512xi32>
    %c1065353216_i32_8 = arith.constant 1065353216 : i32
    %56 = vector.broadcast %c1065353216_i32_8 : i32 to vector<8x512xi32>
    %57 = arith.ori %55, %56 : vector<8x512xi32>
    %58 = tpu.bitcast %57 : vector<8x512xi32> -> vector<8x512xf32>
    %cst_9 = arith.constant 1.000000e+00 : f32
    %59 = vector.broadcast %cst_9 : f32 to vector<8x512xf32>
    %60 = arith.subf %58, %59 : vector<8x512xf32>
    %61 = math.log %53 : vector<8x512xf32>
    %cst_10 = arith.constant -2.000000e+00 : f32
    %62 = vector.broadcast %cst_10 : f32 to vector<8x512xf32>
    %63 = arith.mulf %62, %61 : vector<8x512xf32>
    %64 = math.sqrt %63 : vector<8x512xf32>
    %cst_11 = arith.constant 6.28318548 : f32
    %65 = vector.broadcast %cst_11 : f32 to vector<8x512xf32>
    %66 = arith.mulf %65, %60 : vector<8x512xf32>
    %67 = math.cos %66 : vector<8x512xf32>
    %68 = arith.mulf %64, %67 : vector<8x512xf32>
    %c0_12 = arith.constant 0 : index
    %c0_13 = arith.constant 0 : index
    %69 = vector.load %arg2[%c0_12, %c0_13] : memref<8x1024xf32, #tpu.memory_space<vmem>>, vector<8x512xf32>
    tpu.vector_store %arg2[%c0_12, %c0_13], %68 {strides = array<i32>} : memref<8x1024xf32, #tpu.memory_space<vmem>>, vector<8x512xf32>,
    %70 = math.sin %66 : vector<8x512xf32>
    %71 = arith.mulf %64, %70 : vector<8x512xf32>
    %c0_14 = arith.constant 0 : index
    %c512 = arith.constant 512 : index
    %72 = vector.load %arg2[%c0_14, %c512] : memref<8x1024xf32, #tpu.memory_space<vmem>>, vector<8x512xf32>
    tpu.vector_store %arg2[%c0_14, %c512], %71 {strides = array<i32>} : memref<8x1024xf32, #tpu.memory_space<vmem>>, vector<8x512xf32>,
    return
  }
  func.func @transform_0(%arg0: i32) -> i32 {
    %c0_i32 = arith.constant 0 : i32
    %c0_i32_0 = arith.constant 0 : i32
    return %c0_i32 : i32
  }
  func.func @transform_1(%arg0: i32) -> (i32, i32) {
    %c0_i32 = arith.constant 0 : i32
    %c0_i32_0 = arith.constant 0 : i32
    return %arg0, %c0_i32 : i32, i32
  }
}

</mosaic_0001>

<bundles_post_ra>
// kernel: tpu_custom_call.1
= control target key start
LH: loop header
LB: loop body
LE: loop exit
PB: predicated region body
PF: predicated region fallthrough
CT: control target
= control target key end

     0   :  { %7 = vsyncpa [#allocation4], 0  ;;  %v10_v0 = vlaneseq  ;;  %s2180_s0 = inlined_call_operand.<no memory space> [shape: u32[1], index: 0, kind: input, shape index: {}]   ;;  %s2181_s1 = inlined_call_operand.hbm [shape: f32[8,1024], index: 1, kind: output, shape index: {}]  }
   0x1   :  { %s30_s8 = smul.u32 2654435769, %s2180_s0  ;;  %s1566_s0 = smov [#allocation3]  }
   0x2   :  { %v11_v1 = vshrl.u32 %v10_v0, 7  ;;  %v13_v2 = vand.u32 127, %v10_v0  ;;  %s1466_s10 = sshll.u32 %s1566_s0, 4  ;;  %s1468_s13 = sshll.u32 %s2181_s1, 4  ;;  %s1467_s10 = int_to_ptr.vmem [resolvable:$true] %s1466_s10  ;;  %s1469_s13 = int_to_ptr.hbm [resolvable:$true] %s1468_s13 }
   0x3   :  { %s31_s9 = sadd.s32 2246822507, %s30_s8 }
   0x4   :  { %v14_v3 = vadd.s32 128, %v13_v2  ;;  %v15_v4 = vadd.s32 256, %v13_v2  ;;  %v16_v5 = vadd.s32 384, %v13_v2  ;;  %v20_v6 = vmul.u32 512, %v11_v1 }
   0x5   :  { %v32_v15 = vstv %s31_s9 }
   0x6   :  { %v21_v7 = vadd.s32 %v20_v6, %v13_v2  ;;  %v22_v8 = vadd.s32 %v20_v6, %v14_v3  ;;  %v23_v9 = vadd.s32 %v20_v6, %v15_v4  ;;  %v24_v10 = vadd.s32 %v20_v6, %v16_v5 }
   0x8   :  { %v25_v11 = vmul.u32 2, %v21_v7  ;;  %v26_v12 = vmul.u32 2, %v22_v8  ;;  %v27_v13 = vmul.u32 2, %v23_v9  ;;  %v28_v14 = vmul.u32 2, %v24_v10 }
   0xa   :  { %v33_v16 = vadd.s32 %v32_v15, %v25_v11  ;;  %v34_v17 = vadd.s32 %v32_v15, %v26_v12  ;;  %v35_v18 = vadd.s32 %v32_v15, %v27_v13  ;;  %v36_v19 = vadd.s32 %v32_v15, %v28_v14 }
   0xb   :  { %v69_v20 = vadd.s32 1, %v25_v11  ;;  %v70_v21 = vadd.s32 1, %v26_v12  ;;  %v71_v30 = vadd.s32 1, %v27_v13  ;;  %v72_v46 = vadd.s32 1, %v28_v14 }
   0xc   :  { %v37_v38 = vshrl.u32 %v33_v16, 16  ;;  %v38_v40 = vshrl.u32 %v34_v17, 16  ;;  %v39_v41 = vshrl.u32 %v35_v18, 16  ;;  %v40_v43 = vshrl.u32 %v36_v19, 16 }
   0xd   :  { %v73_v22 = vadd.s32 %v69_v20, %v32_v15  ;;  %v74_v23 = vadd.s32 %v70_v21, %v32_v15  ;;  %v75_v35 = vadd.s32 %v71_v30, %v32_v15  ;;  %v76_v55 = vadd.s32 %v72_v46, %v32_v15 }
   0xe   :  { %v41_v47 = vxor.u32 %v37_v38, %v33_v16  ;;  %v42_v49 = vxor.u32 %v38_v40, %v34_v17  ;;  %v43_v50 = vxor.u32 %v39_v41, %v35_v18  ;;  %v44_v52 = vxor.u32 %v40_v43, %v36_v19 }
   0xf   :  { %v77_v24 = vshrl.u32 %v73_v22, 16  ;;  %v78_v25 = vshrl.u32 %v74_v23, 16  ;;  %v79_v44 = vshrl.u32 %v75_v35, 16  ;;  %v80_v0 = vshrl.u32 %v76_v55, 16 }
  0x10   :  { %v45_v56 = vmul.u32 2146121005, %v41_v47  ;;  %v46_v58 = vmul.u32 2146121005, %v42_v49  ;;  %v47_v59 = vmul.u32 2146121005, %v43_v50 }
  0x11   :  { %v81_v26 = vxor.u32 %v77_v24, %v73_v22  ;;  %v82_v27 = vxor.u32 %v78_v25, %v74_v23  ;;  %v83_v53 = vxor.u32 %v79_v44, %v75_v35  ;;  %v48_v61 = vmul.u32 2146121005, %v44_v52 }
  0x12   :  { %v49_v1 = vshrl.u32 %v45_v56, 15  ;;  %v50_v2 = vshrl.u32 %v46_v58, 15  ;;  %v51_v5 = vshrl.u32 %v47_v59, 15  ;;  %v84_v8 = vxor.u32 %v80_v0, %v76_v55 }
  0x13   :  { %v85_v28 = vmul.u32 2146121005, %v81_v26  ;;  %v86_v29 = vmul.u32 2146121005, %v82_v27  ;;  %v87_v62 = vmul.u32 2146121005, %v83_v53 }
  0x14   :  { %v52_v6 = vshrl.u32 %v48_v61, 15  ;;  %v53_v10 = vxor.u32 %v49_v1, %v45_v56  ;;  %v54_v11 = vxor.u32 %v50_v2, %v46_v58  ;;  %v55_v14 = vxor.u32 %v51_v5, %v47_v59 }
  0x15   :  { %v89_v31 = vshrl.u32 %v85_v28, 15  ;;  %v90_v32 = vshrl.u32 %v86_v29, 15  ;;  %v91_v7 = vshrl.u32 %v87_v62, 15  ;;  %v88_v17 = vmul.u32 2146121005, %v84_v8 }
  0x16   :  { %v56_v15 = vxor.u32 %v52_v6, %v48_v61  ;;  %v57_v18 = vmul.u32 2221713035, %v53_v10  ;;  %v58_v20 = vmul.u32 2221713035, %v54_v11  ;;  %v59_v22 = vmul.u32 2221713035, %v55_v14 }
  0x17   :  { %v93_v33 = vxor.u32 %v89_v31, %v85_v28  ;;  %v94_v34 = vxor.u32 %v90_v32, %v86_v29  ;;  %v95_v16 = vxor.u32 %v91_v7, %v87_v62  ;;  %v92_v25 = vshrl.u32 %v88_v17, 15 }
  0x18   :  { %v60_v23 = vmul.u32 2221713035, %v56_v15  ;;  %v61_v27 = vshrl.u32 %v57_v18, 16  ;;  %v62_v28 = vshrl.u32 %v58_v20, 16  ;;  %v63_v31 = vshrl.u32 %v59_v22, 16 }
  0x19   :  { %v97_v36 = vmul.u32 2221713035, %v93_v33  ;;  %v98_v37 = vmul.u32 2221713035, %v94_v34  ;;  %v99_v24 = vmul.u32 2221713035, %v95_v16  ;;  %v1587_v35 = vxor.u32 %v92_v25, %v88_v17 }
  0x1a   :  { %v64_v32 = vshrl.u32 %v60_v23, 16  ;;  %v67_v41 = vxor.u32 %v63_v31, %v59_v22  ;;  %v1560_v47 = vmov 2475754826   ;;  %v1561_v50 = vmov 2131351028  }
  0x1b   :  { %v101_v39 = vshrl.u32 %v97_v36, 16  ;;  %v102_v42 = vshrl.u32 %v98_v37, 16  ;;  %v103_v33 = vshrl.u32 %v99_v24, 16  ;;  %v1562_v53 = vmov 2102212464  }
  0x1c   :  { %v111_v1 = vshrl.u32 %v67_v41, 9 }
  0x1d   :  { %v105_v45 = vxor.u32 %v101_v39, %v97_v36  ;;  %v106_v51 = vxor.u32 %v102_v42, %v98_v37  ;;  %v65_v37 = vxor.u32 %v61_v27, %v57_v18  ;;  %v66_v39 = vxor.u32 %v62_v28, %v58_v20 }
  0x1e   :  { %v1591_v42 = vxor.u32 %v64_v32, %v60_v23  ;;  %v107_v43 = vxor.u32 %v103_v33, %v99_v24  ;;  %v1615_v20 = vor.u32 1065353216, %v111_v1 }
  0x1f   :  { %v129_v48 = vshrl.u32 %v105_v45, 9  ;;  %v130_v60 = vshrl.u32 %v106_v51, 9  ;;  %v1559_v45 = vmov 683565275   ;;  %v109_v61 = vshrl.u32 %v65_v37, 9 }
  0x20   :  { %v110_v62 = vshrl.u32 %v66_v39, 9  ;;  %v131_v2 = vshrl.u32 %v107_v43, 9 }
  0x21   :  { %v133_v54 = vor.u32 1065353216, %v129_v48  ;;  %v134_v3 = vor.u32 1065353216, %v130_v60  ;;  %v100_v60 = vmul.u32 2221713035, %v1587_v35 }
  0x22   :  { %v135_v15 = vor.u32 1065353216, %v131_v2 }
  0x23   :  { %v1481_v57 = vadd.f32 -1.0, %v133_v54  ;;  %v1482_v12 = vadd.f32 -1.0, %v134_v3 }
  0x24   :  { %v1626_v31 = vadd.f32 -1.0, %v135_v15 }
  0x25   :  { %v1580_v63 = vmul.f32 6.2831855, %v1481_v57  ;;  %v1583_v21 = vmul.f32 6.2831855, %v1482_v12  ;;  %v1563_v57 = vmov 920167782  }
  0x26   :  { %v1607_v12 = vor.u32 1065353216, %v109_v61 }
  0x27   :  { %v212_v4 = vand.u32 2139095040, %v1580_v63  ;;  %v209_v26 = vand.u32 2147483647, %v1580_v63  ;;  %v366_v30 = vand.u32 2139095040, %v1583_v21  ;;  %v363_v18 = vand.u32 2147483647, %v1583_v21 }
  0x29   :  { %v213_v9 = vshrl.u32 %v212_v4, 23  ;;  %v216_v36 = vand.u32 8388607, %v209_v26  ;;  %v367_v40 = vshrl.u32 %v366_v30, 23  ;;  %v1564_v4 = vmov 1326507024  }
  0x2b   :  { %v1485_v13 = vadd.s32 4294967169, %v213_v9  ;;  %v217_v44 = vor.u32 8388608, %v216_v36  ;;  %v1488_v59 = vadd.s32 4294967169, %v367_v40 }
  0x2d   :  { %v219_v19 = vadd.s32 1, %v1485_v13  ;;  %v1605_v9 = vshll.u32 %v217_v44, 8  ;;  %v373_v11 = vadd.s32 1, %v1488_v59 }
  0x2f   :  { %vm220_vm0 = vcmp.gt.s32.totalorder %v219_v19, 0  ;;  %v258_v25 = vand.u32 65535, %v1605_v9  ;;  %vm374_vm5 = vcmp.gt.s32.totalorder %v373_v11, 0  ;;  %v259_v30 = vshrl.u32 %v1605_v9, 16 }
  0x30   :  { %v221_v29 = vsel %vm220_vm0, %v219_v19, 0  ;;  %v1613_v19 = vor.u32 1065353216, %v110_v62  ;;  %v375_v39 = vsel %vm374_vm5, %v373_v11, 0 }
  0x31   :  { %v223_v34 = vand.u32 31, %v221_v29  ;;  %v222_v55 = vshrl.u32 %v221_v29, 5 }
  0x33   :  { %v224_v38 = vsub.s32 32, %v223_v34  ;;  %v226_v46 = vshll.u32 %v1559_v45, %v223_v34  ;;  %v229_v48 = vshll.u32 %v1560_v47, %v223_v34  ;;  %v232_v52 = vshll.u32 %v1561_v50, %v223_v34 }
  0x34   :  { %v235_v56 = vshll.u32 %v1562_v53, %v223_v34  ;;  %v238_v0 = vshll.u32 %v1563_v57, %v223_v34  ;;  %vm241_vm1 = vcmp.lt.s32.totalorder %v222_v55, 1  ;;  %vm244_vm2 = vcmp.lt.s32.totalorder %v222_v55, 4 }
  0x35   :  { %v227_v49 = vshrl.u32 %v1560_v47, %v224_v38  ;;  %v230_v51 = vshrl.u32 %v1561_v50, %v224_v38  ;;  %v233_v54 = vshrl.u32 %v1562_v53, %v224_v38  ;;  %v236_v58 = vshrl.u32 %v1563_v57, %v224_v38 }
  0x36   :  { %v225_v3 = vshrl.u32 %v1559_v45, %v224_v38  ;;  %v239_v5 = vshrl.u32 %v1564_v4, %v224_v38  ;;  %vm243_vm3 = vcmp.lt.s32.totalorder %v222_v55, 3  ;;  %vm242_vm4 = vcmp.lt.s32.totalorder %v222_v55, 2 }
  0x37   :  { %v228_v6 = vor.u32 %v227_v49, %v226_v46  ;;  %v231_v7 = vor.u32 %v230_v51, %v229_v48  ;;  %v234_v8 = vor.u32 %v233_v54, %v232_v52  ;;  %v237_v10 = vor.u32 %v236_v58, %v235_v56 }
  0x38   :  { %v240_v13 = vor.u32 %v239_v5, %v238_v0  ;;  %v1631_v34 = vand.u32 8388607, %v363_v18  ;;  %v377_v49 = vand.u32 31, %v375_v39  ;;  %v1635_v55 = vshrl.u32 %v375_v39, 5 }
  0x39   :  { %v246_v14 = vsel %vm244_vm2, %v234_v8, 2102212464  ;;  %v245_v16 = vsel %vm241_vm1, %v225_v3, %v228_v6  ;;  %v249_v22 = vsel %vm241_vm1, %v228_v6, %v231_v7  ;;  %v250_v23 = vsel %vm244_vm2, %v237_v10, 920167782 }
  0x3a   :  { %v247_v17 = vsel %vm243_vm3, %v231_v7, %v246_v14  ;;  %v253_v24 = vsel %vm241_vm1, %v231_v7, %v234_v8  ;;  %v251_v28 = vsel %vm243_vm3, %v234_v8, %v250_v23  ;;  %v254_v29 = vsel %vm244_vm2, %v240_v13, 1326507024 }
  0x3b   :  { %v1621_v27 = vsel %vm242_vm4, %v245_v16, %v247_v17  ;;  %v252_v32 = vsel %vm242_vm4, %v249_v22, %v251_v28  ;;  %v255_v33 = vsel %vm243_vm3, %v237_v10, %v254_v29  ;;  %v1637_v6 = vsub.s32 32, %v377_v49 }
  0x3c   :  { %v256_v36 = vsel %vm242_vm4, %v253_v24, %v255_v33  ;;  %v282_v37 = vand.u32 65535, %v252_v32  ;;  %v283_v38 = vshrl.u32 %v252_v32, 16  ;;  %v302_v43 = vmul.u32 %v1605_v9, %v1621_v27 }
  0x3d   :  { %v260_v40 = vand.u32 65535, %v256_v36  ;;  %v261_v41 = vshrl.u32 %v256_v36, 16  ;;  %v1565_v8 = vmov 0   ;;  %v380_v11 = vshll.u32 %v1559_v45, %v377_v49 }
  0x3e   :  { %v284_v44 = vmul.u32 %v282_v37, %v258_v25  ;;  %v285_v46 = vmul.u32 %v283_v38, %v258_v25  ;;  %v286_v48 = vmul.u32 %v282_v37, %v259_v30  ;;  %v287_v58 = vmul.u32 %v283_v38, %v259_v30 }
  0x3f   :  { %v262_v51 = vmul.u32 %v260_v40, %v258_v25  ;;  %v263_v52 = vmul.u32 %v261_v41, %v258_v25  ;;  %v264_v54 = vmul.u32 %v260_v40, %v259_v30  ;;  %v265_v56 = vmul.u32 %v261_v41, %v259_v30 }
  0x40   :  { %v288_v59 = vshll.u32 %v285_v46, 16  ;;  %v290_v61 = vshll.u32 %v286_v48, 16  ;;  %v289_v1 = vshrl.u32 %v285_v46, 16  ;;  %v291_v2 = vshrl.u32 %v286_v48, 16 }
  0x41   :  { %v266_v62 = vshll.u32 %v263_v52, 16  ;;  %v268_v0 = vshll.u32 %v264_v54, 16  ;;  %v267_v3 = vshrl.u32 %v263_v52, 16  ;;  %v383_v15 = vshll.u32 %v1560_v47, %v377_v49 }
  0x42   :  { %vm292_vm6 = vc.u32 %v284_v44, %v288_v59  ;;  %v294_v5 = vadd.s32 %v288_v59, %v284_v44  ;;  %v269_v16 = vshrl.u32 %v264_v54, 16  ;;  %v381_v25 = vshrl.u32 %v1560_v47, %v1637_v6 }
  0x43   :  { %vm270_vm7 = vc.u32 %v262_v51, %v266_v62  ;;  %v272_v7 = vadd.s32 %v266_v62, %v262_v51  ;;  %v293_v10 = vsel %vm292_vm6, 1, %v1565_v8  ;;  %v384_v28 = vshrl.u32 %v1561_v50, %v1637_v6 }
  0x44   :  { %v271_v13 = vsel %vm270_vm7, 1, %v1565_v8  ;;  %v295_v14 = vadd.s32 %v293_v10, %v287_v58  ;;  %vm296_vm8 = vc.u32 %v294_v5, %v290_v61  ;;  %v386_v30 = vshll.u32 %v1561_v50, %v377_v49 }
  0x45   :  { %v273_v17 = vadd.s32 %v271_v13, %v265_v56  ;;  %vm274_vm9 = vc.u32 %v272_v7, %v268_v0  ;;  %v297_v22 = vsel %vm296_vm8, 1, %v1565_v8  ;;  %v387_v32 = vshrl.u32 %v1562_v53, %v1637_v6 }
  0x46   :  { %v275_v23 = vsel %vm274_vm9, 1, %v1565_v8  ;;  %v299_v24 = vadd.s32 %v297_v22, %v295_v14  ;;  %v389_v33 = vshll.u32 %v1562_v53, %v377_v49  ;;  %v382_v37 = vor.u32 %v381_v25, %v380_v11 }
  0x47   :  { %v277_v29 = vadd.s32 %v275_v23, %v273_v17  ;;  %v1653_v38 = vor.u32 %v384_v28, %v383_v15  ;;  %v390_v39 = vshrl.u32 %v1563_v57, %v1637_v6  ;;  %v1657_v41 = vadd.s32 %v294_v5, %v290_v61 }
  0x48   :  { %v300_v36 = vadd.s32 %v299_v24, %v289_v1  ;;  %v392_v44 = vshll.u32 %v1563_v57, %v377_v49  ;;  %v393_v46 = vshrl.u32 %v1564_v4, %v1637_v6  ;;  %v388_v51 = vor.u32 %v387_v32, %v386_v30 }
  0x49   :  { %v278_v40 = vadd.s32 %v277_v29, %v267_v3  ;;  %v391_v52 = vor.u32 %v390_v39, %v389_v33  ;;  %vm395_vm10 = vcmp.lt.s32.totalorder %v1635_v55, 1  ;;  %vm397_vm11 = vcmp.lt.s32.totalorder %v1635_v55, 3 }
  0x4a   :  { %v301_v48 = vadd.s32 %v300_v36, %v291_v2  ;;  %v394_v56 = vor.u32 %v393_v46, %v392_v44  ;;  %vm398_vm12 = vcmp.lt.s32.totalorder %v1635_v55, 4  ;;  %v371_v59 = vor.u32 8388608, %v1631_v34 }
  0x4b   :  { %v1663_v54 = vadd.s32 %v278_v40, %v269_v16  ;;  %vm396_vm13 = vcmp.lt.s32.totalorder %v1635_v55, 2  ;;  %v403_v49 = vsel %vm395_vm10, %v382_v37, %v1653_v38  ;;  %v1674_v61 = vshrl.u32 %v100_v60, 16 }
  0x4c   :  { %v305_v58 = vadd.s32 1, %v301_v48  ;;  %v1477_v62 = vadd.f32 -1.0, %v1607_v12  ;;  %v404_v0 = vsel %vm398_vm12, %v391_v52, 920167782  ;;  %v112_v34 = vshrl.u32 %v1591_v42, 9 }
  0x4d   :  { %vm304_vm14 = vc.u32 %v1663_v54, %v1657_v41  ;;  %v405_v2 = vsel %vm397_vm11, %v388_v51, %v404_v0  ;;  %v407_v3 = vsel %vm395_vm10, %v1653_v38, %v388_v51  ;;  %v1688_v5 = vadd.f32 -1.0, %v1613_v19 }
  0x4e   :  { %v306_v1 = vsel %vm304_vm14, %v305_v58, %v301_v48  ;;  %v406_v7 = vsel %vm396_vm13, %v403_v49, %v405_v2  ;;  %v408_v42 = vsel %vm398_vm12, %v394_v56, 1326507024  ;;  %v1698_v10 = vadd.f32 -1.0, %v1615_v20 }
  0x4f   :  { %v307_v12 = vadd.s32 %v306_v1, %v302_v43  ;;  %v1701_v11 = vmul.f32 6.2831855, %v1626_v31  ;;  %v409_v19 = vsel %vm397_vm11, %v391_v52, %v408_v42  ;;  %v1705_v13 = vshll.u32 %v371_v59, 8 }
  0x50   :  { %v125_v14 = vsub.f32 1.0, %v1477_v62  ;;  %v410_v27 = vsel %vm396_vm13, %v407_v3, %v409_v19  ;;  %v437_v43 = vshrl.u32 %v406_v7, 16  ;;  %v116_v22 = vor.u32 1065353216, %v112_v34 }
  0x51   :  { %v308_v9 = vadd.s32 536870912, %v307_v12  ;;  %v412_v15 = vand.u32 65535, %v1705_v13  ;;  %v413_v16 = vshrl.u32 %v1705_v13, 16  ;;  %v414_v20 = vand.u32 65535, %v410_v27 }
  0x52   :  { %v415_v17 = vshrl.u32 %v410_v27, 16  ;;  %v379_v23 = vshrl.u32 %v1559_v45, %v1637_v6  ;;  %v436_v24 = vand.u32 65535, %v406_v7  ;;  %v520_v30 = vand.u32 2139095040, %v1701_v11 }
  0x53   :  { %v1711_v31 = vshrl.u32 %v308_v9, 30  ;;  %v416_v25 = vmul.u32 %v414_v20, %v412_v15  ;;  %v418_v29 = vmul.u32 %v414_v20, %v413_v16  ;;  %v126_v32 = vsub.f32 1.0, %v1688_v5 }
  0x54   :  { %v417_v28 = vmul.u32 %v415_v17, %v412_v15  ;;  %v127_v33 = vsub.f32 1.0, %v1698_v10  ;;  %v439_v39 = vmul.u32 %v437_v43, %v412_v15  ;;  %1517 = vlog2.f32 %v125_v14 }
  0x55   :  { %v310_v36 = vshll.u32 %v1711_v31, 30  ;;  %v419_v40 = vmul.u32 %v415_v17, %v413_v16  ;;  %v422_v46 = vshll.u32 %v418_v29, 16  ;;  %v399_v6 = vsel %vm395_vm10, %v379_v23, %v382_v37 }
  0x56   :  { %v420_v44 = vshll.u32 %v417_v28, 16  ;;  %v438_v52 = vmul.u32 %v436_v24, %v412_v15  ;;  %v440_v56 = vmul.u32 %v436_v24, %v413_v16  ;;  %v442_v59 = vshll.u32 %v439_v39, 16 }
  0x57   :  { %v1719_v48 = vsub.s32 %v307_v12, %v310_v36  ;;  %v521_v49 = vshrl.u32 %v520_v30, 23  ;;  %v400_v62 = vsel %vm398_vm12, %v388_v51, 2102212464  ;;  %v421_v0 = vshrl.u32 %v417_v28, 16 }
  0x58   :  { %vm424_vm15 = vc.u32 %v416_v25, %v420_v44  ;;  %v426_v58 = vadd.s32 %v420_v44, %v416_v25  ;;  %v441_v1 = vmul.u32 %v437_v43, %v413_v16  ;;  %v444_v5 = vshll.u32 %v440_v56, 16 }
  0x59   :  { %v425_v34 = vsel %vm424_vm15, 1, %v1565_v8  ;;  %v313_v2 = vsub.s32 0, %v1719_v48  ;;  %vm312_vm1 = vcmp.lt.s32.totalorder %v1719_v48, 0  ;;  %vm446_vm2 = vc.u32 %v438_v52, %v442_v59 }
  0x5a   :  { %v427_v3 = vadd.s32 %v425_v34, %v419_v40  ;;  %vm428_vm0 = vc.u32 %v426_v58, %v422_v46  ;;  %v448_v12 = vadd.s32 %v442_v59, %v438_v52  ;;  %v1518_v7 = vpop.eup %1517  ;;  %v423_v42 = vshrl.u32 %v418_v29, 16 }
  0x5b   :  { %v429_v37 = vsel %vm428_vm0, 1, %v1565_v8  ;;  %v447_v51 = vsel %vm446_vm2, 1, %v1565_v8  ;;  %v1491_v19 = vadd.s32 4294967169, %v521_v49  ;;  %v401_v14 = vsel %vm397_vm11, %v1653_v38, %v400_v62 }
  0x5c   :  { %v431_v10 = vadd.s32 %v429_v37, %v427_v3  ;;  %v443_v9 = vshrl.u32 %v439_v39, 16  ;;  %v449_v27 = vadd.s32 %v447_v51, %v441_v1  ;;  %vm450_vm3 = vc.u32 %v448_v12, %v444_v5 }
  0x5d   :  { %v314_v43 = vsel %vm312_vm1, %v313_v2, %v1719_v48  ;;  %v451_v16 = vsel %vm450_vm3, 1, %v1565_v8  ;;  %v527_v20 = vadd.s32 1, %v1491_v19  ;;  %v1480_v17 = vadd.f32 -1.0, %v116_v22 }
  0x5e   :  { %v432_v15 = vadd.s32 %v431_v10, %v421_v0  ;;  %1519 = vlog2.f32 %v126_v32  ;;  %v445_v23 = vshrl.u32 %v440_v56, 16  ;;  %v453_v24 = vadd.s32 %v451_v16, %v449_v27 }
  0x5f   :  { %1521 = vlog2.f32 %v127_v33  ;;  %v1737_v28 = vadd.s32 %v448_v12, %v444_v5  ;;  %v315_v29 = vclz %v314_v43  ;;  %v402_v38 = vsel %vm396_vm13, %v399_v6, %v401_v14 }
  0x60   :  { %v1735_v25 = vadd.s32 %v432_v15, %v423_v42  ;;  %v454_v30 = vadd.s32 %v453_v24, %v443_v9  ;;  %vm528_vm4 = vcmp.gt.s32.totalorder %v527_v20, 0  ;;  %v108_v36 = vxor.u32 %v1674_v61, %v100_v60 }
  0x61   :  { %v128_v39 = vsub.f32 1.0, %v1480_v17  ;;  %v456_v32 = vmul.u32 %v1705_v13, %v402_v38  ;;  %v517_v33 = vand.u32 2147483647, %v1701_v11  ;;  %v529_v40 = vsel %vm528_vm4, %v527_v20, 0 }
  0x62   :  { %v455_v22 = vadd.s32 %v454_v30, %v445_v23  ;;  %vm458_vm5 = vc.u32 %v1735_v25, %v1737_v28  ;;  %v146_v46 = vmul.f32 0.6931472, %v1518_v7  ;;  %v1486_v55 = vadd.s32 4294967294, %v315_v29 }
  0x63   :  { %v531_v52 = vand.u32 31, %v529_v40  ;;  %v132_v58 = vshrl.u32 %v108_v36, 9  ;;  %1523 = vlog2.f32 %v128_v39  ;;  %v524_v13 = vand.u32 8388607, %v517_v33 }
  0x64   :  { %v1520_v44 = vpop.eup %1519  ;;  %v459_v6 = vadd.s32 1, %v455_v22  ;;  %v1752_v62 = vmul.f32 -2.0, %v146_v46  ;;  %vm1487_vm6 = vcmp.lt.s32.totalorder %v1486_v55, 0  ;;  %v1754_v0 = vshrl.u32 %v529_v40, 5 }
  0x65   :  { %v1522_v56 = vpop.eup %1521  ;;  %v1748_v59 = vsub.s32 32, %v531_v52  ;;  %v148_v60 = vmul.f32 0.6931472, %v1520_v44  ;;  %v537_v1 = vshll.u32 %v1560_v47, %v531_v52  ;;  %v543_v2 = vshll.u32 %v1562_v53, %v531_v52 }
  0x66   :  { %v460_v35 = vsel %vm458_vm5, %v459_v6, %v455_v22  ;;  %v150_v49 = vmul.f32 0.6931472, %v1522_v56  ;;  %v540_v37 = vshll.u32 %v1561_v50, %v531_v52  ;;  %v546_v7 = vshll.u32 %v1563_v57, %v531_v52 }
  0x67   :  { %v461_v61 = vadd.s32 %v460_v35, %v456_v32  ;;  %v544_v3 = vshrl.u32 %v1563_v57, %v1748_v59  ;;  %v538_v5 = vshrl.u32 %v1561_v50, %v1748_v59  ;;  %v541_v12 = vshrl.u32 %v1562_v53, %v1748_v59 }
  0x68   :  { %v136_v42 = vor.u32 1065353216, %v132_v58  ;;  %v1766_v10 = vmul.f32 -2.0, %v148_v60  ;;  %v525_v19 = vor.u32 8388608, %v524_v13  ;;  %v1770_v14 = vsel %vm1487_vm6, 0, %v1486_v55 }
  0x69   :  { %v462_v34 = vadd.s32 536870912, %v461_v61  ;;  %v534_v9 = vshll.u32 %v1559_v45, %v531_v52  ;;  %v535_v27 = vshrl.u32 %v1560_v47, %v1748_v59  ;;  %v547_v43 = vshrl.u32 %v1564_v4, %v1748_v59  ;;  %v1524_v15 = vpop.eup %1523 }
  0x6a   :  { %v1777_v16 = vmul.f32 -2.0, %v150_v49  ;;  %1525 = vrsqrt.f32 %v1752_v62  ;;  %v545_v17 = vor.u32 %v544_v3, %v543_v2  ;;  %v1781_v23 = vor.u32 %v538_v5, %v537_v1 }
  0x6b   :  { %v1768_v51 = vshrl.u32 %v462_v34, 30  ;;  %v1783_v24 = vor.u32 %v541_v12, %v540_v37  ;;  %v548_v29 = vor.u32 %v547_v43, %v546_v7  ;;  %vm552_vm7 = vcmp.lt.s32.totalorder %v1754_v0, 4 }
  0x6c   :  { %v1484_v38 = vadd.f32 -1.0, %v136_v42  ;;  %v323_v30 = vsub.s32 4294967266, %v1770_v14  ;;  %vm549_vm8 = vcmp.lt.s32.totalorder %v1754_v0, 1  ;;  %v152_v39 = vmul.f32 0.6931472, %v1524_v15 }
  0x6d   :  { %v464_v20 = vshll.u32 %v1768_v51, 30  ;;  %1527 = vrsqrt.f32 %v1766_v10  ;;  %v1789_v22 = vor.u32 %v535_v27, %v534_v9  ;;  %v1791_v32 = vshll.u32 %v525_v19, 8 }
  0x6e   :  { %vm551_vm10 = vcmp.lt.s32.totalorder %v1754_v0, 3  ;;  %v558_v44 = vsel %vm552_vm7, %v545_v17, 920167782  ;;  %1529 = vrsqrt.f32 %v1777_v16  ;;  %vm550_vm11 = vcmp.lt.s32.totalorder %v1754_v0, 2 }
  0x6f   :  { %v465_v36 = vsub.s32 %v461_v61, %v464_v20  ;;  %v561_v46 = vsel %vm549_vm8, %v1781_v23, %v1783_v24  ;;  %v562_v55 = vsel %vm552_vm7, %v548_v29, 1326507024  ;;  %v303_v52 = vadd.s32 %v1657_v41, %v1663_v54 }
  0x70   :  { %v1804_v6 = vpop.eup %1525  ;;  %v319_v56 = vsub.s32 32, %v1770_v14  ;;  %v324_v58 = vadd.s32 127, %v323_v30  ;;  %v557_v61 = vsel %vm549_vm8, %v1789_v22, %v1781_v23  ;;  %v559_v13 = vsel %vm551_vm10, %v1783_v24, %v558_v44 }
  0x71   :  { %vm466_vm9 = vcmp.lt.s32.totalorder %v465_v36, 0  ;;  %v467_v40 = vsub.s32 0, %v465_v36  ;;  %v563_v49 = vsel %vm551_vm10, %v545_v17, %v562_v55  ;;  %v1818_v34 = vmul.f32 -2.0, %v152_v39 }
  0x72   :  { %v1820_v41 = vmul.f32 6.2831855, %v1484_v38  ;;  %v564_v54 = vsel %vm550_vm11, %v561_v46, %v563_v49  ;;  %v566_v1 = vand.u32 65535, %v1791_v32  ;;  %v158_v3 = vmul.f32 %v1804_v6, %v1752_v62 }
  0x73   :  { %v468_v35 = vsel %vm466_vm9, %v467_v40, %v465_v36  ;;  %v1825_v2 = vpop.eup %1527  ;;  %v167_v5 = vand.u32 2147483648, %v1752_v62  ;;  %v569_v12 = vshrl.u32 %v564_v54, 16  ;;  %v320_v7 = vshll.u32 %v1719_v48, %v1770_v14 }
  0x74   :  { %v469_v60 = vclz %v468_v35  ;;  %v321_v42 = vshrl.u32 %v303_v52, %v319_v56  ;;  %v560_v19 = vsel %vm550_vm11, %v557_v61, %v559_v13  ;;  %v568_v9 = vand.u32 65535, %v564_v54  ;;  %v1834_v27 = vpop.eup %1529 }
  0x75   :  { %v325_v43 = vshll.u32 %v324_v58, 23  ;;  %v457_v15 = vadd.s32 %v1737_v28, %v1735_v25  ;;  %v567_v20 = vshrl.u32 %v1791_v32, 16  ;;  %v170_v17 = vmul.f32 %v1825_v2, %v1766_v10 }
  0x76   :  { %v1489_v37 = vadd.s32 4294967294, %v469_v60  ;;  %v571_v38 = vmul.u32 %v569_v12, %v566_v1  ;;  %v674_v48 = vand.u32 2139095040, %v1820_v41  ;;  %v591_v40 = vshrl.u32 %v560_v19, 16 }
  0x77   :  { %v159_v44 = vmul.f32 %v1804_v6, %v158_v3  ;;  %v322_v46 = vor.u32 %v321_v42, %v320_v7  ;;  %v570_v55 = vmul.u32 %v568_v9, %v566_v1  ;;  %v590_v52 = vand.u32 65535, %v560_v19 }
  0x78   :  { %vm1490_vm12 = vcmp.lt.s32.totalorder %v1489_v37, 0  ;;  %v326_v25 = vor.u32 4788187, %v325_v43  ;;  %v572_v58 = vmul.u32 %v568_v9, %v567_v20  ;;  %v182_v35 = vmul.f32 %v1834_v27, %v1777_v16 }
  0x79   :  { %v472_v29 = vsel %vm1490_vm12, 0, %v1489_v37  ;;  %v573_v60 = vmul.u32 %v569_v12, %v567_v20  ;;  %v574_v61 = vshll.u32 %v571_v38, 16  ;;  %v675_v13 = vshrl.u32 %v674_v48, 23 }
  0x7a   :  { %v473_v14 = vsub.s32 32, %v472_v29  ;;  %v474_v30 = vshll.u32 %v465_v36, %v472_v29  ;;  %v477_v39 = vsub.s32 4294967266, %v472_v29  ;;  %v576_v36 = vshll.u32 %v572_v58, 16 }
  0x7b   :  { %v593_v37 = vmul.u32 %v591_v40, %v566_v1  ;;  %v329_v29 = vcvt.s32.f32 %v322_v46  ;;  %vm578_vm13 = vc.u32 %v570_v55, %v574_v61  ;;  %v580_v3 = vadd.s32 %v574_v61, %v570_v55 }
  0x7c   :  { %v475_v28 = vshrl.u32 %v457_v15, %v473_v14  ;;  %v478_v56 = vadd.s32 127, %v477_v39  ;;  %v594_v7 = vmul.u32 %v590_v52, %v567_v20  ;;  %v327_v42 = vand.u32 2147483647, %v326_v25 }
  0x7d   :  { %v579_v43 = vsel %vm578_vm13, 1, %v1565_v8  ;;  %v592_v15 = vmul.u32 %v590_v52, %v566_v1  ;;  %vm211_vm14 = vcmp.lt.s32.totalorder %v1580_v63, 0  ;;  %v575_v14 = vshrl.u32 %v571_v38, 16 }
  0x7e   :  { %v476_v49 = vor.u32 %v475_v28, %v474_v30  ;;  %v479_v54 = vshll.u32 %v478_v56, 23  ;;  %v581_v12 = vadd.s32 %v579_v43, %v573_v60  ;;  %vm582_vm15 = vc.u32 %v580_v3, %v576_v36 }
  0x7f   :  { %v583_v30 = vsel %vm582_vm15, 1, %v1565_v8  ;;  %v595_v39 = vmul.u32 %v591_v40, %v567_v20  ;;  %v596_v28 = vshll.u32 %v593_v37, 16  ;;  %v533_v46 = vshrl.u32 %v1559_v45, %v1748_v59 }
  0x80   :  { %v480_v19 = vor.u32 4788187, %v479_v54  ;;  %v483_v9 = vcvt.s32.f32 %v476_v49  ;;  %v585_v55 = vadd.s32 %v583_v30, %v581_v12  ;;  %v598_v25 = vshll.u32 %v594_v7, 16 }
  0x81   :  { %v1494_v56 = vadd.s32 4294967169, %v675_v13  ;;  %vm1852_vm0 = vcmp.le.f32.partialorder %v209_v26, 0.7853982  ;;  %v330_v38 = vmul.f32 %v329_v29, %v327_v42  ;;  %v554_v52 = vsel %vm552_vm7, %v1783_v24, 2102212464 }
  0x82   :  { %v481_v48 = vand.u32 2147483647, %v480_v19  ;;  %vm600_vm1 = vc.u32 %v592_v15, %v596_v28  ;;  %v602_v20 = vadd.s32 %v596_v28, %v592_v15  ;;  %v171_v40 = vmul.f32 %v1825_v2, %v170_v17 }
  0x83   :  { %v577_v60 = vshrl.u32 %v572_v58, 16  ;;  %v586_v59 = vadd.s32 %v585_v55, %v575_v14  ;;  %v601_v61 = vsel %vm600_vm1, 1, %v1565_v8  ;;  %v597_v49 = vshrl.u32 %v593_v37, 16 }
  0x84   :  { %v484_v13 = vmul.f32 %v483_v9, %v481_v48  ;;  %v603_v54 = vadd.s32 %v601_v61, %v595_v39  ;;  %vm604_vm2 = vc.u32 %v602_v20, %v598_v25  ;;  %v553_v26 = vsel %vm549_vm8, %v533_v46, %v1789_v22 }
  0x85   :  { %v555_v24 = vsel %vm551_vm10, %v1781_v23, %v554_v52  ;;  %v605_v36 = vsel %vm604_vm2, 1, %v1565_v8  ;;  %v681_v29 = vadd.s32 1, %v1494_v56  ;;  %v1868_v17 = vmul.f32 0.5, %v159_v44 }
  0x86   :  { %v331_v58 = vxor.u32 2147483648, %v330_v38  ;;  %v599_v3 = vshrl.u32 %v594_v7, 16  ;;  %v607_v42 = vadd.s32 %v605_v36, %v603_v54  ;;  %v1870_v19 = vadd.s32 %v586_v59, %v577_v60 }
  0x87   :  { %v1872_v37 = vadd.s32 %v602_v20, %v598_v25  ;;  %v2182_v43 = vand.u32 2147483647, %v1820_v41  ;;  %vm682_vm3 = vcmp.gt.s32.totalorder %v681_v29, 0  ;;  %v485_v22 = vxor.u32 2147483648, %v484_v13 }
  0x88   :  { %v556_v15 = vsel %vm550_vm11, %v553_v26, %v555_v24  ;;  %v608_v23 = vadd.s32 %v607_v42, %v597_v49  ;;  %v683_v9 = vsel %vm682_vm3, %v681_v29, 0  ;;  %v183_v44 = vmul.f32 %v1834_v27, %v182_v35 }
  0x89   :  { %vm365_vm4 = vcmp.lt.s32.totalorder %v1583_v21, 0  ;;  %v685_v7 = vand.u32 31, %v683_v9  ;;  %v161_v12 = vsub.f32 1.5, %v1868_v17  ;;  %v172_v48 = vmul.f32 0.5, %v171_v40 }
  0x8a   :  { %v332_v30 = vsel %vm211_vm14, %v331_v58, %v330_v38  ;;  %v609_v39 = vadd.s32 %v608_v23, %v599_v3  ;;  %vm1885_vm5 = vcmp.le.f32.partialorder %v363_v18, 0.7853982  ;;  %v610_v28 = vmul.u32 %v1791_v32, %v556_v15 }
  0x8b   :  { %vm612_vm6 = vc.u32 %v1870_v19, %v1872_v37  ;;  %v1892_v35 = vsub.s32 32, %v685_v7  ;;  %v486_v46 = vsel %vm365_vm4, %v485_v22, %v484_v13  ;;  %v678_v25 = vand.u32 8388607, %v2182_v43 }
  0x8c   :  { %v613_v55 = vadd.s32 1, %v609_v39  ;;  %v688_v56 = vshll.u32 %v1559_v45, %v685_v7  ;;  %v1902_v18 = vsel %vm1852_vm0, %v1580_v63, %v332_v30  ;;  %v691_v38 = vshll.u32 %v1560_v47, %v685_v7 }
  0x8d   :  { %v689_v32 = vshrl.u32 %v1560_v47, %v1892_v35  ;;  %v692_v52 = vshrl.u32 %v1561_v50, %v1892_v35  ;;  %v1909_v40 = vshrl.u32 %v683_v9, 5  ;;  %v697_v60 = vshll.u32 %v1562_v53, %v685_v7 }
  0x8e   :  { %v614_v20 = vsel %vm612_vm6, %v613_v55, %v609_v39  ;;  %v698_v59 = vshrl.u32 %v1563_v57, %v1892_v35  ;;  %v1917_v61 = vsel %vm1885_vm5, %v1583_v21, %v486_v46  ;;  %v694_v49 = vshll.u32 %v1561_v50, %v685_v7 }
  0x8f   :  { %v615_v13 = vadd.s32 %v614_v20, %v610_v28  ;;  %v695_v47 = vshrl.u32 %v1562_v53, %v1892_v35  ;;  %v1922_v54 = vmul.f32 0.5, %v183_v44  ;;  %v1926_v26 = vmul.f32 %v1902_v18, %v1902_v18 }
  0x90   :  { %v679_v24 = vor.u32 8388608, %v678_v25  ;;  %v690_v36 = vor.u32 %v689_v32, %v688_v56  ;;  %v1928_v17 = vor.u32 %v692_v52, %v691_v38  ;;  %v700_v58 = vshll.u32 %v1563_v57, %v685_v7 }
  0x91   :  { %v616_v29 = vadd.s32 536870912, %v615_v13  ;;  %v701_v3 = vshrl.u32 %v1564_v4, %v1892_v35  ;;  %v173_v50 = vsub.f32 1.5, %v172_v48  ;;  %v1935_v53 = vmul.f32 %v1917_v61, %v1917_v61 }
  0x92   :  { %v699_v42 = vor.u32 %v698_v59, %v697_v60  ;;  %vm703_vm7 = vcmp.lt.s32.totalorder %v1909_v40, 1  ;;  %v338_v22 = vmul.f32 -0.001358992, %v1926_v26  ;;  %v696_v23 = vor.u32 %v695_v47, %v694_v49 }
  0x93   :  { %v1939_v15 = vshrl.u32 %v616_v29, 30  ;;  %vm706_vm8 = vcmp.lt.s32.totalorder %v1909_v40, 4  ;;  %v345_v9 = vmul.f32 -0.00019511016, %v1926_v26  ;;  %vm705_vm9 = vcmp.lt.s32.totalorder %v1909_v40, 3 }
  0x94   :  { %v1945_v4 = vshll.u32 %v679_v24, 8  ;;  %v702_v7 = vor.u32 %v701_v3, %v700_v58  ;;  %vm704_vm10 = vcmp.lt.s32.totalorder %v1909_v40, 2  ;;  %v711_v48 = vsel %vm703_vm7, %v690_v36, %v1928_v17 }
  0x95   :  { %v618_v44 = vshll.u32 %v1939_v15, 30  ;;  %v162_v30 = vmul.f32 %v1804_v6, %v161_v12  ;;  %v185_v39 = vsub.f32 1.5, %v1922_v54  ;;  %v499_v28 = vmul.f32 -0.00019511016, %v1935_v53 }
  0x96   :  { %v712_v46 = vsel %vm706_vm8, %v699_v42, 920167782  ;;  %v1958_v55 = vmul.f32 %v1825_v2, %v173_v50  ;;  %v339_v25 = vadd.f32 0.041655596, %v338_v22  ;;  %v346_v38 = vadd.f32 0.008332121, %v345_v9 }
  0x97   :  { %v619_v56 = vsub.s32 %v615_v13, %v618_v44  ;;  %v713_v32 = vsel %vm705_vm9, %v696_v23, %v712_v46  ;;  %v715_v6 = vsel %vm703_vm7, %v1928_v17, %v696_v23  ;;  %v720_v12 = vand.u32 65535, %v1945_v4 }
  0x98   :  { %v714_v52 = vsel %vm704_vm10, %v711_v48, %v713_v32  ;;  %v716_v2 = vsel %vm706_vm8, %v702_v7, 1326507024  ;;  %v721_v60 = vshrl.u32 %v1945_v4, 16  ;;  %v492_v59 = vmul.f32 -0.001358992, %v1935_v53 }
  0x99   :  { %vm620_vm11 = vcmp.lt.s32.totalorder %v619_v56, 0  ;;  %v621_v20 = vsub.s32 0, %v619_v56  ;;  %v500_v13 = vadd.f32 0.008332121, %v499_v28  ;;  %v717_v49 = vsel %vm705_vm9, %v699_v42, %v716_v2 }
  0x9a   :  { %v745_v47 = vshrl.u32 %v714_v52, 16  ;;  %v687_v29 = vshrl.u32 %v1559_v45, %v1892_v35  ;;  %v718_v58 = vsel %vm704_vm10, %v715_v6, %v717_v49  ;;  %v744_v3 = vand.u32 65535, %v714_v52 }
  0x9b   :  { %v622_v24 = vsel %vm620_vm11, %v621_v20, %v619_v56  ;;  %v1979_v50 = vmul.f32 %v162_v30, %v1752_v62  ;;  %v722_v9 = vand.u32 65535, %v718_v58  ;;  %v723_v44 = vshrl.u32 %v718_v58, 16 }
  0x9c   :  { %v623_v22 = vclz %v622_v24  ;;  %v1982_v7 = vmul.f32 %v339_v25, %v1926_v26  ;;  %v347_v42 = vmul.f32 %v346_v38, %v1926_v26  ;;  %v611_v48 = vadd.s32 %v1872_v37, %v1870_v19 }
  0x9d   :  { %v747_v28 = vmul.u32 %v745_v47, %v720_v12  ;;  %v493_v45 = vadd.f32 0.041655596, %v492_v59  ;;  %v725_v46 = vmul.u32 %v723_v44, %v720_v12  ;;  %v726_v32 = vmul.u32 %v722_v9, %v721_v60 }
  0x9e   :  { %v1492_v35 = vadd.s32 4294967294, %v623_v22  ;;  %v501_v52 = vmul.f32 %v500_v13, %v1935_v53  ;;  %v707_v30 = vsel %vm703_vm7, %v687_v29, %v690_v36  ;;  %v724_v6 = vmul.u32 %v722_v9, %v720_v12 }
  0x9f   :  { %v1990_v20 = vmul.u32 %v744_v3, %v721_v60  ;;  %v708_v25 = vsel %vm706_vm8, %v696_v23, 2102212464  ;;  %v728_v38 = vshll.u32 %v725_v46, 16  ;;  %v746_v2 = vmul.u32 %v744_v3, %v720_v12 }
  0xa0   :  { %vm1493_vm12 = vcmp.lt.s32.totalorder %v1492_v35, 0  ;;  %vm164_vm13 = vcmp.eq.f32.partialorder %v1752_v62, inf  ;;  %v727_v37 = vmul.u32 %v723_v44, %v721_v60  ;;  %v730_v59 = vshll.u32 %v726_v32, 16 }
  0xa1   :  { %v626_v19 = vsel %vm1493_vm12, 0, %v1492_v35  ;;  %v750_v49 = vshll.u32 %v747_v28, 16  ;;  %v749_v22 = vmul.u32 %v745_v47, %v721_v60  ;;  %vm732_vm15 = vc.u32 %v724_v6, %v728_v38 }
  0xa2   :  { %v627_v24 = vsub.s32 32, %v626_v19  ;;  %v628_v13 = vshll.u32 %v619_v56, %v626_v19  ;;  %v631_v58 = vsub.s32 4294967266, %v626_v19  ;;  %v734_v36 = vadd.s32 %v728_v38, %v724_v6 }
  0xa3   :  { %v751_v29 = vshrl.u32 %v747_v28, 16  ;;  %v752_v9 = vshll.u32 %v1990_v20, 16  ;;  %v729_v23 = vshrl.u32 %v725_v46, 16  ;;  %v733_v12 = vsel %vm732_vm15, 1, %v1565_v8 }
  0xa4   :  { %v629_v43 = vshrl.u32 %v611_v48, %v627_v24  ;;  %v632_v57 = vadd.s32 127, %v631_v58  ;;  %v735_v3 = vadd.s32 %v733_v12, %v727_v37  ;;  %vm736_vm1 = vc.u32 %v734_v36, %v730_v59 }
  0xa5   :  { %vm754_vm2 = vc.u32 %v746_v2, %v750_v49  ;;  %v756_v44 = vadd.s32 %v750_v49, %v746_v2  ;;  %v737_v56 = vsel %vm736_vm1, 1, %v1565_v8  ;;  %vm166_vm3 = vcmp.eq.f32.partialorder %v1752_v62, 0.0 }
  0xa6   :  { %v630_v35 = vor.u32 %v629_v43, %v628_v13  ;;  %v633_v14 = vshll.u32 %v632_v57, 23  ;;  %v755_v60 = vsel %vm754_vm2, 1, %v1565_v8  ;;  %vm176_vm6 = vcmp.eq.f32.partialorder %v1766_v10, inf }
  0xa7   :  { %v731_v47 = vshrl.u32 %v726_v32, 16  ;;  %v739_v48 = vadd.s32 %v737_v56, %v735_v3  ;;  %v757_v28 = vadd.s32 %v755_v60, %v749_v22  ;;  %vm758_vm7 = vc.u32 %v756_v44, %v752_v9 }
  0xa8   :  { %vm188_vm8 = vcmp.eq.f32.partialorder %v1777_v16, inf  ;;  %v634_v46 = vor.u32 4788187, %v633_v14  ;;  %v637_v6 = vcvt.s32.f32 %v630_v35  ;;  %v709_v43 = vsel %vm705_vm9, %v1928_v17, %v708_v25 }
  0xa9   :  { %v759_v57 = vsel %vm758_vm7, 1, %v1565_v8  ;;  %v348_v38 = vadd.f32 -0.16666654, %v347_v42  ;;  %v740_v2 = vadd.s32 %v739_v48, %v729_v23  ;;  %v753_v19 = vshrl.u32 %v1990_v20, 16 }
  0xaa   :  { %v761_v37 = vadd.s32 %v759_v57, %v757_v28  ;;  %v186_v32 = vmul.f32 %v1834_v27, %v185_v39  ;;  %v494_v59 = vmul.f32 %v493_v45, %v1935_v53  ;;  %v635_v49 = vand.u32 2147483647, %v634_v46 }
  0xab   :  { %v2011_v14 = vadd.s32 %v756_v44, %v752_v9  ;;  %vm178_vm11 = vcmp.eq.f32.partialorder %v1766_v10, 0.0  ;;  %v502_v24 = vadd.f32 -0.16666654, %v501_v52  ;;  %v710_v8 = vsel %vm704_vm10, %v707_v30, %v709_v43 }
  0xac   :  { %v2016_v17 = vadd.s32 %v740_v2, %v731_v47  ;;  %v762_v42 = vadd.s32 %v761_v37, %v751_v29  ;;  %v165_v54 = vsel %vm164_vm13, %v1752_v62, %v1979_v50  ;;  %v175_v27 = vmul.f32 %v1958_v55, %v1766_v10 }
  0xad   :  { %vm190_vm9 = vcmp.eq.f32.partialorder %v1777_v16, 0.0  ;;  %v333_v39 = vsub.s32 4, %v1711_v31  ;;  %v638_v45 = vmul.f32 %v637_v6, %v635_v49  ;;  %v341_v52 = vadd.f32 -0.4999988, %v1982_v7 }
  0xae   :  { %v349_v40 = vmul.f32 %v348_v38, %v1926_v26  ;;  %vm519_vm10 = vcmp.lt.s32.totalorder %v1701_v11, 0  ;;  %v763_v30 = vadd.s32 %v762_v42, %v753_v19  ;;  %vm2031_vm12 = vcmp.le.f32.partialorder %v517_v33, 0.7853982 }
  0xaf   :  { %v639_v50 = vxor.u32 2147483648, %v638_v45  ;;  %v764_v55 = vmul.u32 %v1945_v4, %v710_v8  ;;  %vm766_vm13 = vc.u32 %v2016_v17, %v2011_v14  ;;  %v187_v25 = vmul.f32 %v186_v32, %v1777_v16 }
  0xb0   :  { %v495_v7 = vadd.f32 -0.4999988, %v494_v59  ;;  %v503_v13 = vmul.f32 %v502_v24, %v1935_v53  ;;  %v767_v58 = vadd.s32 1, %v763_v30  ;;  %1531 = vrsqrt.f32 %v1818_v34 }
  0xb1   :  { %v334_v33 = vsel %vm211_vm14, %v333_v39, %v1711_v31  ;;  %v487_v22 = vsub.s32 4, %v1768_v51  ;;  %v640_v4 = vsel %vm519_vm10, %v639_v50, %v638_v45  ;;  %v342_v36 = vmul.f32 %v341_v52, %v1926_v26 }
  0xb2   :  { %v350_v29 = vadd.f32 1.0, %v349_v40  ;;  %v2051_v9 = vsel %vm2031_vm12, %v1701_v11, %v640_v4  ;;  %v768_v23 = vsel %vm766_vm13, %v767_v58, %v763_v30  ;;  %v2057_v12 = vsel %vm166_vm3, %v167_v5, %v165_v54 }
  0xb3   :  { %v177_v31 = vsel %vm176_vm6, %v1766_v10, %v175_v27  ;;  %v645_v26 = vmul.f32 %v2051_v9, %v2051_v9  ;;  %v769_v3 = vadd.s32 %v768_v23, %v764_v55  ;;  %v189_v44 = vsel %vm188_vm8, %v1777_v16, %v187_v25 }
  0xb4   :  { %v496_v35 = vmul.f32 %v495_v7, %v1935_v53  ;;  %v504_v56 = vadd.f32 1.0, %v503_v13  ;;  %v641_v60 = vsub.s32 4, %v1939_v15  ;;  %v336_v62 = vsel %vm1852_vm0, 0, %v334_v33 }
  0xb5   :  { %v646_v5 = vmul.f32 -0.001358992, %v645_v26  ;;  %v653_v47 = vmul.f32 -0.00019511016, %v645_v26  ;;  %v770_v48 = vadd.s32 536870912, %v769_v3  ;;  %v2071_v28 = vadd.f32 1.0, %v342_v36 }
  0xb6   :  { %v2074_v46 = vmul.f32 %v350_v29, %v1902_v18  ;;  %v353_v6 = vand.u32 3, %v336_v62  ;;  %v488_v43 = vsel %vm365_vm4, %v487_v22, %v1768_v51  ;;  %v2079_v53 = vpop.eup %1531  ;;  %v2189_v57 = vand.u32 2147483648, %v1766_v10 }
  0xb7   :  { %v647_v38 = vadd.f32 0.041655596, %v646_v5  ;;  %v654_v2 = vadd.f32 0.008332121, %v653_v47  ;;  %v2087_v19 = vshrl.u32 %v770_v48, 30  ;;  %v2190_v18 = vand.u32 2147483648, %v1777_v16 }
  0xb8   :  { %v2085_v1 = vsel %vm178_vm11, %v2189_v57, %v177_v31  ;;  %v2095_v32 = vadd.f32 1.0, %v496_v35  ;;  %v2098_v51 = vmul.f32 %v504_v56, %v1917_v61  ;;  %v642_v10 = vsel %vm519_vm10, %v641_v60, %v1939_v15 }
  0xb9   :  { %v2093_v37 = vsel %vm190_vm9, %v2190_v18, %v189_v44  ;;  %v490_v59 = vsel %vm1885_vm5, 0, %v488_v43  ;;  %v648_v49 = vmul.f32 %v647_v38, %v645_v26  ;;  %v655_v24 = vmul.f32 %v654_v2, %v645_v26 }
  0xba   :  { %v772_v8 = vshll.u32 %v2087_v19, 30  ;;  %v356_v16 = vxor.u32 2147483648, %v2074_v46  ;;  %vm358_vm14 = vcmp.eq.s32.totalorder %v353_v6, 2  ;;  %v359_v42 = vxor.u32 2147483648, %v2071_v28 }
  0xbb   :  { %v507_v54 = vand.u32 3, %v490_v59  ;;  %v644_v61 = vsel %vm2031_vm12, 0, %v642_v10  ;;  %v649_v27 = vadd.f32 -0.4999988, %v648_v49  ;;  %v656_v39 = vadd.f32 -0.16666654, %v655_v24 }
  0xbc   :  { %v773_v45 = vsub.s32 %v769_v3, %v772_v8  ;;  %vm352_vm0 = vweird.f32 %v1580_v63  ;;  %vm355_vm4 = vcmp.eq.s32.totalorder %v353_v6, 0  ;;  %v510_v0 = vxor.u32 2147483648, %v2098_v51 }
  0xbd   :  { %v513_v15 = vxor.u32 2147483648, %v2095_v32  ;;  %v661_v52 = vand.u32 3, %v644_v61  ;;  %v650_v40 = vmul.f32 %v649_v27, %v645_v26  ;;  %v657_v30 = vmul.f32 %v656_v39, %v645_v26 }
  0xbe   :  { %vm774_vm5 = vcmp.lt.s32.totalorder %v773_v45, 0  ;;  %v775_v50 = vsub.s32 0, %v773_v45  ;;  %vm354_vm15 = vcmp.lt.s32.totalorder %v353_v6, 2  ;;  %v360_v20 = vsel %vm358_vm14, %v359_v42, %v2074_v46 }
  0xbf   :  { %vm509_vm1 = vcmp.eq.s32.totalorder %v507_v54, 0  ;;  %vm512_vm2 = vcmp.eq.s32.totalorder %v507_v54, 2  ;;  %v357_v55 = vsel %vm355_vm4, %v2071_v28, %v356_v16  ;;  %v2118_v25 = vadd.f32 1.0, %v650_v40 }
  0xc0   :  { %v658_v7 = vadd.f32 1.0, %v657_v30  ;;  %v776_v13 = vsel %vm774_vm5, %v775_v50, %v773_v45  ;;  %vm506_vm3 = vweird.f32 %v1583_v21  ;;  %vm508_vm6 = vcmp.lt.s32.totalorder %v507_v54, 2 }
  0xc1   :  { %vm666_vm7 = vcmp.eq.s32.totalorder %v661_v52, 2  ;;  %v777_v58 = vclz %v776_v13  ;;  %v511_v33 = vsel %vm509_vm1, %v2095_v32, %v510_v0  ;;  %v514_v22 = vsel %vm512_vm2, %v513_v15, %v2098_v51 }
  0xc2   :  { %v659_v4 = vmul.f32 %v658_v7, %v2051_v9  ;;  %v667_v36 = vxor.u32 2147483648, %v2118_v25  ;;  %v361_v29 = vsel %vm354_vm15, %v357_v55, %v360_v20  ;;  %vm662_vm8 = vcmp.lt.s32.totalorder %v661_v52, 2 }
  0xc3   :  { %vm663_vm11 = vcmp.eq.s32.totalorder %v661_v52, 0  ;;  %v1495_v23 = vadd.s32 4294967294, %v777_v58  ;;  %v977_v3 = vadd.s32 3, %v336_v62  ;;  %v1132_v44 = vadd.s32 3, %v490_v59 }
  0xc4   :  { %v664_v31 = vxor.u32 2147483648, %v659_v4  ;;  %v668_v26 = vsel %vm666_vm7, %v667_v36, %v659_v4  ;;  %v515_v35 = vsel %vm508_vm6, %v511_v33, %v514_v22  ;;  %vm660_vm9 = vweird.f32 %v1701_v11 }
  0xc5   :  { %v765_v56 = vadd.s32 %v2011_v14, %v2016_v17  ;;  %vm1496_vm10 = vcmp.lt.s32.totalorder %v1495_v23, 0  ;;  %v978_v5 = vand.u32 3, %v977_v3  ;;  %v1133_v47 = vand.u32 3, %v1132_v44 }
  0xc6   :  { %v665_v9 = vsel %vm663_vm11, %v2118_v25, %v664_v31  ;;  %v780_v60 = vsel %vm1496_vm10, 0, %v1495_v23  ;;  %v362_v62 = vsel %vm352_vm0, nan, %v361_v29  ;;  %v516_v38 = vsel %vm506_vm3, nan, %v515_v35 }
  0xc7   :  { %v669_v48 = vsel %vm662_vm8, %v665_v9, %v668_v26  ;;  %v781_v6 = vsub.s32 32, %v780_v60  ;;  %v782_v43 = vshll.u32 %v773_v45, %v780_v60  ;;  %v785_v57 = vsub.s32 4294967266, %v780_v60 }
  0xc8   :  { %v670_v2 = vsel %vm660_vm9, nan, %v669_v48  ;;  %v1287_v14 = vadd.s32 3, %v644_v61  ;;  %vm979_vm12 = vcmp.lt.s32.totalorder %v978_v5, 2  ;;  %vm980_vm13 = vcmp.eq.s32.totalorder %v978_v5, 0 }
  0xc9   :  { %v783_v17 = vshrl.u32 %v765_v56, %v781_v6  ;;  %v786_v18 = vadd.s32 127, %v785_v57  ;;  %v982_v10 = vsel %vm980_vm13, %v2071_v28, %v356_v16  ;;  %vm983_vm14 = vcmp.eq.s32.totalorder %v978_v5, 2 }
  0xca   :  { %vm1134_vm4 = vcmp.lt.s32.totalorder %v1133_v47, 2  ;;  %vm1135_vm5 = vcmp.eq.s32.totalorder %v1133_v47, 0  ;;  %v825_v24 = vmul.f32 %v362_v62, %v2057_v12  ;;  %v826_v8 = vmul.f32 %v516_v38, %v2085_v1 }
  0xcb   :  { %v784_v59 = vor.u32 %v783_v17, %v782_v43  ;;  %v787_v49 = vshll.u32 %v786_v18, 23  ;;  %v827_v54 = vmul.f32 %v670_v2, %v2093_v37  ;;  %v985_v61 = vsel %vm983_vm14, %v359_v42, %v2074_v46 }
  0xcc   :  { %v1137_v27 = vsel %vm1135_vm5, %v2095_v32, %v510_v0  ;;  %vm1138_vm15 = vcmp.eq.s32.totalorder %v1133_v47, 2  ;;  %829 = vst [vmem:[#allocation3] sm:$0xff] %v825_v24  ;;  %v986_v45 = vsel %vm979_vm12, %v982_v10, %v985_v61  ;;  %v194_v40 = vmul.f32 %v2079_v53, %v1818_v34 }
  0xcd   :  { %v788_v39 = vor.u32 4788187, %v787_v49  ;;  %v791_v16 = vcvt.s32.f32 %v784_v59  ;;  %v1140_v52 = vsel %vm1138_vm15, %v513_v15, %v2098_v51  ;;  %830 = vst [vmem:[#allocation3 + $0x8] sm:$0xff] %v826_v8  ;;  %v987_v28 = vsel %vm352_vm0, nan, %v986_v45 }
  0xce   :  { %v1141_v46 = vsel %vm1134_vm4, %v1137_v27, %v1140_v52  ;;  %v1288_v42 = vand.u32 3, %v1287_v14  ;;  %831 = vst [vmem:[#allocation3 + $0x10] sm:$0xff] %v827_v54  ;;  %v1453_v50 = vmul.f32 %v987_v28, %v2057_v12  ;;  %v195_v20 = vmul.f32 %v2079_v53, %v194_v40 }
  0xcf   :  { %v789_v0 = vand.u32 2147483647, %v788_v39  ;;  %v1142_v30 = vsel %vm506_vm3, nan, %v1141_v46  ;;  %vm673_vm0 = vcmp.lt.s32.totalorder %v1820_v41, 0  ;;  %v795_v55 = vsub.s32 4, %v2087_v19 }
  0xd0   :  { %vm1289_vm1 = vcmp.lt.s32.totalorder %v1288_v42, 2  ;;  %vm1290_vm2 = vcmp.eq.s32.totalorder %v1288_v42, 0  ;;  %vm1293_vm6 = vcmp.eq.s32.totalorder %v1288_v42, 2  ;;  %v1454_v63 = vmul.f32 %v1142_v30, %v2085_v1  ;;  %1457 = vst [vmem:[#allocation3 + $0x20] sm:$0xff] %v1453_v50 }
  0xd1   :  { %v792_v32 = vmul.f32 %v791_v16, %v789_v0  ;;  %v1292_v51 = vsel %vm1290_vm2, %v2118_v25, %v664_v31  ;;  %v1295_v15 = vsel %vm1293_vm6, %v667_v36, %v659_v4  ;;  %v2191_v7 = vand.u32 2147483647, %v1820_v41 }
  0xd2   :  { %v1296_v21 = vsel %vm1289_vm1, %v1292_v51, %v1295_v15  ;;  %1458 = vst [vmem:[#allocation3 + $0x28] sm:$0xff] %v1454_v63  ;;  %v196_v1 = vmul.f32 0.5, %v195_v20  ;;  %v796_v33 = vsel %vm673_vm0, %v795_v55, %v2087_v19  ;;  %vm200_vm7 = vcmp.eq.f32.partialorder %v1818_v34, inf }
  0xd3   :  { %vm672_vm3 = vcmp.le.f32.partialorder %v2191_v7, 0.7853982  ;;  %v793_v12 = vxor.u32 2147483648, %v792_v32  ;;  %v1297_v13 = vsel %vm660_vm9, nan, %v1296_v21  ;;  %vm202_vm9 = vcmp.eq.f32.partialorder %v1818_v34, 0.0 }
  0xd4   :  { %v1455_v25 = vmul.f32 %v1297_v13, %v2093_v37  ;;  %v798_v36 = vsel %vm672_vm3, 0, %v796_v33  ;;  %v197_v31 = vsub.f32 1.5, %v196_v1  ;;  %v203_v57 = vand.u32 2147483648, %v1818_v34 }
  0xd5   :  { %v794_v58 = vsel %vm673_vm0, %v793_v12, %v792_v32  ;;  %v1442_v44 = vadd.s32 3, %v798_v36  ;;  %v815_v60 = vand.u32 3, %v798_v36  ;;  %vm814_vm4 = vweird.f32 %v1820_v41 }
  0xd6   :  { %v797_v22 = vsel %vm672_vm3, %v1820_v41, %v794_v58  ;;  %1459 = vst [vmem:[#allocation3 + $0x30] sm:$0xff] %v1455_v25  ;;  %v198_v56 = vmul.f32 %v2079_v53, %v197_v31 }
  0xd7   :  { %v799_v4 = vmul.f32 %v797_v22, %v797_v22  ;;  %v1443_v5 = vand.u32 3, %v1442_v44  ;;  %vm820_vm8 = vcmp.eq.s32.totalorder %v815_v60, 2  ;;  %vm816_vm10 = vcmp.lt.s32.totalorder %v815_v60, 2 }
  0xd8   :  { %v199_v48 = vmul.f32 %v198_v56, %v1818_v34  ;;  %vm817_vm12 = vcmp.eq.s32.totalorder %v815_v60, 0 }
  0xd9   :  { %v800_v29 = vmul.f32 -0.001358992, %v799_v4  ;;  %v807_v23 = vmul.f32 -0.00019511016, %v799_v4  ;;  %vm1448_vm11 = vcmp.eq.s32.totalorder %v1443_v5, 2  ;;  %vm1445_vm13 = vcmp.eq.s32.totalorder %v1443_v5, 0 }
  0xda   :  { %v201_v38 = vsel %vm200_vm7, %v1818_v34, %v199_v48  ;;  %vm1444_vm14 = vcmp.lt.s32.totalorder %v1443_v5, 2 }
  0xdb   :  { %v801_v26 = vadd.f32 0.041655596, %v800_v29  ;;  %v808_v3 = vadd.f32 0.008332121, %v807_v23  ;;  %v204_v18 = vsel %vm202_vm9, %v203_v57, %v201_v38 }
  0xdd   :  { %v802_v11 = vmul.f32 %v801_v26, %v799_v4  ;;  %v809_v35 = vmul.f32 %v808_v3, %v799_v4 }
  0xdf   :  { %v803_v37 = vadd.f32 -0.4999988, %v802_v11  ;;  %v810_v9 = vadd.f32 -0.16666654, %v809_v35 }
  0xe1   :  { %v804_v19 = vmul.f32 %v803_v37, %v799_v4  ;;  %v811_v47 = vmul.f32 %v810_v9, %v799_v4 }
  0xe3   :  { %v805_v6 = vadd.f32 1.0, %v804_v19  ;;  %v812_v43 = vadd.f32 1.0, %v811_v47 }
  0xe5   :  { %v813_v62 = vmul.f32 %v812_v43, %v797_v22  ;;  %v821_v53 = vxor.u32 2147483648, %v805_v6 }
  0xe7   :  { %v818_v2 = vxor.u32 2147483648, %v813_v62  ;;  %v822_v14 = vsel %vm820_vm8, %v821_v53, %v813_v62  ;;  %v1450_v17 = vsel %vm1448_vm11, %v821_v53, %v813_v62 }
  0xe9   :  { %v819_v10 = vsel %vm817_vm12, %v805_v6, %v818_v2  ;;  %v1447_v59 = vsel %vm1445_vm13, %v805_v6, %v818_v2 }
  0xea   :  { %v823_v49 = vsel %vm816_vm10, %v819_v10, %v822_v14  ;;  %v1451_v24 = vsel %vm1444_vm14, %v1447_v59, %v1450_v17 }
  0xeb   :  { %v824_v34 = vsel %vm814_vm4, nan, %v823_v49  ;;  %v1452_v8 = vsel %vm814_vm4, nan, %v1451_v24 }
  0xec   :  { %v828_v54 = vmul.f32 %v824_v34, %v204_v18  ;;  %v1456_v61 = vmul.f32 %v1452_v8, %v204_v18 }
  0xee   :  { %832 = vst [vmem:[#allocation3 + $0x18] sm:$0xff] %v828_v54 }
  0xef   :  { %1460 = vst [vmem:[#allocation3 + $0x38] sm:$0xff] %v1456_v61 }
  0xf0   :  { %1471 = dma.vmem_to_hbm [thread:$0]  %s1467_s10, 1024, %s1469_s13, [#allocation4]  }
  0xf1   :  { %1557 = dma.done.wait [#allocation4], 1024  }
  0xf2   :  { %1558 = vsyncadd [#allocation4], 4294966272 }
  0xf3   :  { %1476 = vsyncpa [#allocation4], 1 }

</bundles_post_ra>
